<compile_context>
chip_gen: v6e
topology: v6e:2x2x1
jax: 0.10.0
libtpu: 0.0.40
codegen_flags: <defaults>
</compile_context>

<pallas_src>
import math
from functools import partial

import numpy as np
import jax
import jax.numpy as jnp
from jax import lax
from jax.experimental import pallas as pl
from jax.experimental.pallas import tpu as pltpu

MM_DTYPE = jnp.bfloat16      # MXU operand dtype (weights stored bf16, activations cast per matmul)
NEG_BIG = -3.0e38            # padding value for max pooling
RESIZE_TARGET = 139          # toy stand-in for pytorch-fid's 299x299 resize_input
BATCH = 2


# --------------------------------- Pallas kernels ---------------------------------
def _conv_bn_relu_kernel(x_ref, w_ref, sc_ref, sh_ref, o_ref, *, kh, kw, stride):
    """Fused Conv2d(bias=False) + folded eval-mode BatchNorm + ReLU for one batch element.

    x_ref : (H_pad, W_pad, C_in)        f32  (host pre-padded)
    w_ref : (kh*kw, C_in, C_out)        bf16 (one (C_in, C_out) slab per kernel tap)
    sc/sh : (1, C_out)                  f32  folded BN scale / shift
    o_ref : (H_out, W_out_full, C_out)  f32  (column stride, if any, applied by the wrapper)

    One output row per step; each MXU call contracts the full C_in (channels on lanes).
    """
    h_out, w_out, c_out = o_ref.shape
    scale = sc_ref[...]
    shift = sh_ref[...]

    def row(oy, carry):
        iy0 = oy * stride
        acc = jnp.zeros((w_out, c_out), jnp.float32)
        for dy in range(kh):
            xrow = x_ref[iy0 + dy].astype(MM_DTYPE)            # (W_pad, C_in)
            for dx in range(kw):
                acc = acc + jnp.dot(xrow[dx:dx + w_out, :], w_ref[dy * kw + dx],
                                    preferred_element_type=jnp.float32)
        y = acc * scale + shift
        o_ref[oy] = jnp.maximum(y, 0.0)
        return carry

    lax.fori_loop(0, h_out, row, 0)


def _pool_kernel(x_ref, inv_ref, o_ref, *, k, stride, mode):
    """kxk max / average pooling; avg uses inv_ref = 1/valid-count (count_include_pad=False)."""
    h_out, w_out, c = o_ref.shape

    def row(oy, carry):
        iy0 = oy * stride
        if mode == "max":
            r = jnp.full((w_out, c), NEG_BIG, jnp.float32)
        else:
            r = jnp.zeros((w_out, c), jnp.float32)
        for dy in range(k):
            xrow = x_ref[iy0 + dy]                              # (W_pad, C)
            for dx in range(k):
                v = xrow[dx:dx + w_out, :]
                r = jnp.maximum(r, v) if mode == "max" else r + v
        if mode == "avg":
            r = r * inv_ref[oy]                                 # (w_out, 1)
        o_ref[oy] = r
        return carry

    lax.fori_loop(0, h_out, row, 0)


def _global_avg_pool_kernel(x_ref, o_ref):
    """AdaptiveAvgPool2d((1,1)): mean over the full spatial extent."""
    h, w, c = x_ref.shape
    acc = jnp.zeros((1, c), jnp.float32)
    for i in range(h):
        acc = acc + jnp.sum(x_ref[i], axis=0, keepdims=True)
    o_ref[...] = acc * (1.0 / (h * w))


def _resize_lastaxis_kernel(x_ref, r_ref, o_ref):
    """out[i] = R @ x[i]: bilinear interpolation matrix applied along the W axis."""
    h = x_ref.shape[0]

    def row(i, carry):
        o_ref[i] = jnp.dot(r_ref[...], x_ref[i], preferred_element_type=jnp.float32)
        return carry

    lax.fori_loop(0, h, row, 0)


# -------------------------- cached pallas_call builders ---------------------------
_CALL_CACHE = {}


def _conv_call(n, hp, wp, cin, cout, kh, kw, stride):
    key = ("conv", n, hp, wp, cin, cout, kh, kw, stride)
    if key not in _CALL_CACHE:
        h_out = (hp - kh) // stride + 1
        w_full = wp - kw + 1
        fn = pl.pallas_call(
            partial(_conv_bn_relu_kernel, kh=kh, kw=kw, stride=stride),
            out_shape=jax.ShapeDtypeStruct((n, h_out, w_full, cout), jnp.float32),
            grid=(n,),
            in_specs=[
                pl.BlockSpec((None, hp, wp, cin), lambda b: (b, 0, 0, 0)),
                pl.BlockSpec((kh * kw, cin, cout), lambda b: (0, 0, 0)),   # fetched once, reused per batch step
                pl.BlockSpec((1, cout), lambda b: (0, 0)),
                pl.BlockSpec((1, cout), lambda b: (0, 0)),
            ],
            out_specs=pl.BlockSpec((None, h_out, w_full, cout), lambda b: (b, 0, 0, 0)),
            compiler_params=pltpu.CompilerParams(dimension_semantics=("parallel",)),
        )
        _CALL_CACHE[key] = jax.jit(fn)
    return _CALL_CACHE[key]


def _pool_call(n, hp, wp, c, k, stride, mode):
    key = ("pool", n, hp, wp, c, k, stride, mode)
    if key not in _CALL_CACHE:
        h_out = (hp - k) // stride + 1
        w_full = wp - k + 1
        fn = pl.pallas_call(
            partial(_pool_kernel, k=k, stride=stride, mode=mode),
            out_shape=jax.ShapeDtypeStruct((n, h_out, w_full, c), jnp.float32),
            grid=(n,),
            in_specs=[
                pl.BlockSpec((None, hp, wp, c), lambda b: (b, 0, 0, 0)),
                pl.BlockSpec((None, h_out, w_full, 1), lambda b: (0, 0, 0, 0)),
            ],
            out_specs=pl.BlockSpec((None, h_out, w_full, c), lambda b: (b, 0, 0, 0)),
            compiler_params=pltpu.CompilerParams(dimension_semantics=("parallel",)),
        )
        _CALL_CACHE[key] = jax.jit(fn)
    return _CALL_CACHE[key]


def _gap_call(n, h, w, c):
    key = ("gap", n, h, w, c)
    if key not in _CALL_CACHE:
        fn = pl.pallas_call(
            _global_avg_pool_kernel,
            out_shape=jax.ShapeDtypeStruct((n, 1, c), jnp.float32),
            grid=(n,),
            in_specs=[pl.BlockSpec((None, h, w, c), lambda b: (b, 0, 0, 0))],
            out_specs=pl.BlockSpec((None, 1, c), lambda b: (b, 0, 0)),
            compiler_params=pltpu.CompilerParams(dimension_semantics=("parallel",)),
        )
        _CALL_CACHE[key] = jax.jit(fn)
    return _CALL_CACHE[key]


def _resize_call(n, h, w, w_new, c):
    key = ("resize", n, h, w, w_new, c)
    if key not in _CALL_CACHE:
        fn = pl.pallas_call(
            _resize_lastaxis_kernel,
            out_shape=jax.ShapeDtypeStruct((n, h, w_new, c), jnp.float32),
            grid=(n,),
            in_specs=[
                pl.BlockSpec((None, h, w, c), lambda b: (b, 0, 0, 0)),
                pl.BlockSpec((w_new, w), lambda b: (0, 0)),
            ],
            out_specs=pl.BlockSpec((None, h, w_new, c), lambda b: (b, 0, 0, 0)),
            compiler_params=pltpu.CompilerParams(dimension_semantics=("parallel",)),
        )
        _CALL_CACHE[key] = jax.jit(fn)
    return _CALL_CACHE[key]


# ---------------------------- Pallas-backed layer ops ------------------------------
def pallas_conv(x, p):
    w = p["w"]
    kh, kw, cin, cout = w.shape
    ph, pw = p["pad"]
    s = p["stride"]
    xp = jnp.pad(x, ((0, 0), (ph, ph), (pw, pw), (0, 0)))
    n, hp, wp, _ = xp.shape
    y = _conv_call(n, hp, wp, cin, cout, kh, kw, s)(
        xp, w.reshape(kh * kw, cin, cout), p["scale"], p["shift"])
    if s > 1:
        # TODO(synk): column stride is applied by host subsampling; an in-kernel strided
        # pl.ds would avoid computing the skipped columns (only a few cheap layers use it).
        y = y[:, :, ::s, :]
    return y


def pallas_pool(x, k, stride, pad, mode):
    n, h, w, c = x.shape
    pad_val = 0.0 if mode == "avg" else NEG_BIG
    xp = jnp.pad(x, ((0, 0), (pad, pad), (pad, pad), (0, 0)), constant_values=pad_val)
    hp, wp = h + 2 * pad, w + 2 * pad
    h_out = (hp - k) // stride + 1
    w_full = wp - k + 1
    if mode == "avg":       # count_include_pad=False valid-count map (FID inception variant)
        ones = np.pad(np.ones((h, w), np.float32), pad)
        cnt = np.zeros((h_out, w_full), np.float32)
        for dy in range(k):
            for dx in range(k):
                cnt += ones[dy:dy + (h_out - 1) * stride + 1:stride, dx:dx + w_full]
        inv = jnp.asarray((1.0 / cnt)[None, :, :, None])
    else:
        inv = jnp.ones((1, h_out, w_full, 1), jnp.float32)
    y = _pool_call(n, hp, wp, c, k, stride, mode)(xp, inv)
    if stride > 1:
        y = y[:, :, ::stride, :]
    return y


def pallas_gap(x):
    n, h, w, c = x.shape
    return _gap_call(n, h, w, c)(x).reshape(n, c)


def _bilinear_matrix(dst, src):
    """Interpolation matrix matching F.interpolate(mode='bilinear', align_corners=False)."""
    m = np.zeros((dst, src), np.float32)
    scale = src / dst
    for i in range(dst):
        s = (i + 0.5) * scale - 0.5
        s0 = int(np.floor(s))
        t = s - s0
        lo = min(max(s0, 0), src - 1)
        hi = min(max(s0 + 1, 0), src - 1)
        m[i, lo] += 1.0 - t
        m[i, hi] += t
    return m


def pallas_resize(x, out_h, out_w):
    n, h, w, c = x.shape
    rw = jnp.asarray(_bilinear_matrix(out_w, w))
    rh = jnp.asarray(_bilinear_matrix(out_h, h))
    y = _resize_call(n, h, w, out_w, c)(x, rw)        # resize along W
    y = jnp.transpose(y, (0, 2, 1, 3))                # TODO(synk): host transpose glue
    y = _resize_call(n, out_w, h, out_h, c)(y, rh)    # resize along H
    return jnp.transpose(y, (0, 2, 1, 3))


# ------------------------------ parameter construction -----------------------------
class _KeyGen:
    def __init__(self, key):
        self._key = key

    def __call__(self):
        self._key, sub = jax.random.split(self._key)
        return sub


def _conv_p(kg, cin, cout, kh, kw, stride=1, pad=(0, 0)):
    # Conv2d(bias=False) + BatchNorm(eps=1e-3) folded to a per-channel affine (eval mode).
    w = jax.random.normal(kg(), (kh, kw, cin, cout), jnp.float32) * math.sqrt(2.0 / (kh * kw * cin))
    scale = 0.9 + 0.2 * jax.random.uniform(kg(), (1, cout), jnp.float32)
    shift = 0.05 * jax.random.normal(kg(), (1, cout), jnp.float32)
    return {"w": w.astype(MM_DTYPE), "scale": scale, "shift": shift, "stride": stride, "pad": pad}


def _init_a(kg, cin, pool_features):     # FIDInceptionA
    return {
        "stem1x1": _conv_p(kg, cin, 64 + 48 + 64, 1, 1),    # fused [b1x1 | b5x5_1 | b3x3dbl_1]
        "b5x5_2": _conv_p(kg, 48, 64, 5, 5, pad=(2, 2)),
        "b3dbl_2": _conv_p(kg, 64, 96, 3, 3, pad=(1, 1)),
        "b3dbl_3": _conv_p(kg, 96, 96, 3, 3, pad=(1, 1)),
        "pool_proj": _conv_p(kg, cin, pool_features, 1, 1),
    }


def _init_b(kg, cin):                    # InceptionB (Mixed_6a)
    return {
        "b3x3": _conv_p(kg, cin, 384, 3, 3, stride=2),
        "b3dbl_1": _conv_p(kg, cin, 64, 1, 1),
        "b3dbl_2": _conv_p(kg, 64, 96, 3, 3, pad=(1, 1)),
        "b3dbl_3": _conv_p(kg, 96, 96, 3, 3, stride=2),
    }


def _init_c(kg, cin, c7):                # FIDInceptionC
    return {
        "c7": c7,
        "stem1x1": _conv_p(kg, cin, 192 + 2 * c7, 1, 1),    # fused [b1x1 | b7x7_1 | b7x7dbl_1]
        "b7_2": _conv_p(kg, c7, c7, 1, 7, pad=(0, 3)),
        "b7_3": _conv_p(kg, c7, 192, 7, 1, pad=(3, 0)),
        "b7d_2": _conv_p(kg, c7, c7, 7, 1, pad=(3, 0)),
        "b7d_3": _conv_p(kg, c7, c7, 1, 7, pad=(0, 3)),
        "b7d_4": _conv_p(kg, c7, c7, 7, 1, pad=(3, 0)),
        "b7d_5": _conv_p(kg, c7, 192, 1, 7, pad=(0, 3)),
        "pool_proj": _conv_p(kg, cin, 192, 1, 1),
    }


def _init_d(kg, cin):                    # InceptionD (Mixed_7a)
    return {
        "stem1x1": _conv_p(kg, cin, 192 + 192, 1, 1),       # fused [b3x3_1 | b7x7x3_1]
        "b3_2": _conv_p(kg, 192, 320, 3, 3, stride=2),
        "b7x3_2": _conv_p(kg, 192, 192, 1, 7, pad=(0, 3)),
        "b7x3_3": _conv_p(kg, 192, 192, 7, 1, pad=(3, 0)),
        "b7x3_4": _conv_p(kg, 192, 192, 3, 3, stride=2),
    }


def _init_e(kg, cin):                    # FIDInceptionE_1 / E_2
    return {
        "stem1x1": _conv_p(kg, cin, 320 + 384 + 448, 1, 1), # fused [b1x1 | b3x3_1 | b3x3dbl_1]
        "b3_2a": _conv_p(kg, 384, 384, 1, 3, pad=(0, 1)),
        "b3_2b": _conv_p(kg, 384, 384, 3, 1, pad=(1, 0)),
        "b3d_2": _conv_p(kg, 448, 384, 3, 3, pad=(1, 1)),
        "b3d_3a": _conv_p(kg, 384, 384, 1, 3, pad=(0, 1)),
        "b3d_3b": _conv_p(kg, 384, 384, 3, 1, pad=(1, 0)),
        "pool_proj": _conv_p(kg, cin, 192, 1, 1),
    }


def init_params(key):
    kg = _KeyGen(key)
    return {
        "Conv2d_1a": _conv_p(kg, 3, 32, 3, 3, stride=2),
        "Conv2d_2a": _conv_p(kg, 32, 32, 3, 3),
        "Conv2d_2b": _conv_p(kg, 32, 64, 3, 3, pad=(1, 1)),
        "Conv2d_3b": _conv_p(kg, 64, 80, 1, 1),
        "Conv2d_4a": _conv_p(kg, 80, 192, 3, 3),
        "Mixed_5b": _init_a(kg, 192, 32),
        "Mixed_5c": _init_a(kg, 256, 64),
        "Mixed_5d": _init_a(kg, 288, 64),
        "Mixed_6a": _init_b(kg, 288),
        "Mixed_6b": _init_c(kg, 768, 128),
        "Mixed_6c": _init_c(kg, 768, 160),
        "Mixed_6d": _init_c(kg, 768, 160),
        "Mixed_6e": _init_c(kg, 768, 192),
        "Mixed_7a": _init_d(kg, 768),
        "Mixed_7b": _init_e(kg, 1280),
        "Mixed_7c": _init_e(kg, 2048),
    }


# ------------------------------ block forward functions ----------------------------
def _fwd_a(x, p, conv, pool):
    s = conv(x, p["stem1x1"])
    b1 = s[..., :64]
    b5 = conv(s[..., 64:112], p["b5x5_2"])
    b3 = conv(conv(s[..., 112:176], p["b3dbl_2"]), p["b3dbl_3"])
    bp = conv(pool(x, 3, 1, 1, "avg"), p["pool_proj"])
    return jnp.concatenate([b1, b5, b3, bp], axis=-1)


def _fwd_b(x, p, conv, pool):
    b3 = conv(x, p["b3x3"])
    bd = conv(conv(conv(x, p["b3dbl_1"]), p["b3dbl_2"]), p["b3dbl_3"])
    bp = pool(x, 3, 2, 0, "max")
    return jnp.concatenate([b3, bd, bp], axis=-1)


def _fwd_c(x, p, conv, pool):
    c7 = p["c7"]
    s = conv(x, p["stem1x1"])
    b1 = s[..., :192]
    b7 = conv(conv(s[..., 192:192 + c7], p["b7_2"]), p["b7_3"])
    t = s[..., 192 + c7:]
    bd = conv(conv(conv(conv(t, p["b7d_2"]), p["b7d_3"]), p["b7d_4"]), p["b7d_5"])
    bp = conv(pool(x, 3, 1, 1, "avg"), p["pool_proj"])
    return jnp.concatenate([b1, b7, bd, bp], axis=-1)


def _fwd_d(x, p, conv, pool):
    s = conv(x, p["stem1x1"])
    b3 = conv(s[..., :192], p["b3_2"])
    b7 = conv(conv(conv(s[..., 192:], p["b7x3_2"]), p["b7x3_3"]), p["b7x3_4"])
    bp = pool(x, 3, 2, 0, "max")
    return jnp.concatenate([b3, b7, bp], axis=-1)


def _fwd_e(x, p, conv, pool, pool_mode):
    s = conv(x, p["stem1x1"])
    b1 = s[..., :320]
    t3 = s[..., 320:704]
    b3 = jnp.concatenate([conv(t3, p["b3_2a"]), conv(t3, p["b3_2b"])], axis=-1)
    td = conv(s[..., 704:], p["b3d_2"])
    bd = jnp.concatenate([conv(td, p["b3d_3a"]), conv(td, p["b3d_3b"])], axis=-1)
    bp = conv(pool(x, 3, 1, 1, pool_mode), p["pool_proj"])
    return jnp.concatenate([b1, b3, bd, bp], axis=-1)


def inception_v3_forward(inp, params, conv, pool, resize, gap, normalize_input=False):
    """pytorch-fid InceptionV3 forward, default output block 3 (pooled 2048-d features),
    followed by the wrapper's .squeeze()."""
    x = jnp.transpose(inp, (0, 2, 3, 1))                  # NCHW -> NHWC (channels on lanes)
    x = resize(x, RESIZE_TARGET, RESIZE_TARGET)           # resize_input=True (wrapper forces it)
    if normalize_input:                                   # wrapper default: normalize_input=False
        x = 2.0 * x - 1.0
    # block 0
    x = conv(x, params["Conv2d_1a"])
    x = conv(x, params["Conv2d_2a"])
    x = conv(x, params["Conv2d_2b"])
    x = pool(x, 3, 2, 0, "max")
    # block 1
    x = conv(x, params["Conv2d_3b"])
    x = conv(x, params["Conv2d_4a"])
    x = pool(x, 3, 2, 0, "max")
    # block 2
    x = _fwd_a(x, params["Mixed_5b"], conv, pool)
    x = _fwd_a(x, params["Mixed_5c"], conv, pool)
    x = _fwd_a(x, params["Mixed_5d"], conv, pool)
    x = _fwd_b(x, params["Mixed_6a"], conv, pool)
    x = _fwd_c(x, params["Mixed_6b"], conv, pool)
    x = _fwd_c(x, params["Mixed_6c"], conv, pool)
    x = _fwd_c(x, params["Mixed_6d"], conv, pool)
    x = _fwd_c(x, params["Mixed_6e"], conv, pool)
    # block 3
    x = _fwd_d(x, params["Mixed_7a"], conv, pool)
    x = _fwd_e(x, params["Mixed_7b"], conv, pool, "avg")  # FIDInceptionE_1
    x = _fwd_e(x, params["Mixed_7c"], conv, pool, "max")  # FIDInceptionE_2
    return gap(x)                                         # AdaptiveAvgPool2d(1) + squeeze


# --------------------------------- pure-JAX reference ------------------------------
def ref_conv(x, p):
    y = lax.conv_general_dilated(
        x.astype(MM_DTYPE), p["w"],
        window_strides=(p["stride"], p["stride"]),
        padding=((p["pad"][0], p["pad"][0]), (p["pad"][1], p["pad"][1])),
        dimension_numbers=("NHWC", "HWIO", "NHWC"),
        preferred_element_type=jnp.float32)
    y = y * p["scale"].reshape(1, 1, 1, -1) + p["shift"].reshape(1, 1, 1, -1)
    return jnp.maximum(y, 0.0)


def ref_pool(x, k, stride, pad, mode):
    dims, strides = (1, k, k, 1), (1, stride, stride, 1)
    padding = ((0, 0), (pad, pad), (pad, pad), (0, 0))
    if mode == "max":
        return lax.reduce_window(x, -jnp.inf, lax.max, dims, strides, padding)
    s = lax.reduce_window(x, 0.0, lax.add, dims, strides, padding)
    ones = jnp.ones(x.shape[:3] + (1,), x.dtype)
    cnt = lax.reduce_window(ones, 0.0, lax.add, dims, strides, padding)
    return s / cnt                                        # count_include_pad=False


def ref_resize(x, out_h, out_w):
    rw = jnp.asarray(_bilinear_matrix(out_w, x.shape[2]))
    rh = jnp.asarray(_bilinear_matrix(out_h, x.shape[1]))
    y = jnp.einsum("ow,nhwc->nhoc", rw, x)
    return jnp.einsum("ph,nhoc->npoc", rh, y)


def ref_gap(x):
    return jnp.mean(x, axis=(1, 2))


# ----------------------------------------- main -------------------------------------
if __name__ == "__main__":
    root = jax.random.PRNGKey(0)
    pkey, xkey = jax.random.split(root)
    params = init_params(pkey)
    # (N, 3, H, W) images in [0, 1], as fed to the torch wrapper.
    inp = jax.random.uniform(xkey, (BATCH, 3, 64, 64), jnp.float32)

    feats = inception_v3_forward(inp, params, pallas_conv, pallas_pool,
                                 pallas_resize, pallas_gap)
    feats = jax.block_until_ready(feats)
    assert feats.shape == (BATCH, 2048) and feats.dtype == jnp.float32
    assert bool(jnp.all(jnp.isfinite(feats)))

    ref = inception_v3_forward(inp, params, ref_conv, ref_pool, ref_resize, ref_gap)
    ref = jax.block_until_ready(ref)
    rel = float(jnp.linalg.norm(feats - ref) / (jnp.linalg.norm(ref) + 1e-12))
    assert rel < 5e-2, f"Pallas vs reference relative L2 error too large: {rel}"

    print("KERNEL_OK")
</pallas_src>

<mosaic_0001>
module attributes {stable_mosaic.version = 11 : i64} {
  func.func @_resize_lastaxis_kernel(%arg0: i32, %arg1: memref<1x64x64x3xf32, #tpu.memory_space<vmem>>, %arg2: memref<139x64xf32, #tpu.memory_space<vmem>>, %arg3: memref<1x64x139x3xf32, #tpu.memory_space<vmem>>) attributes {dimension_semantics = [#tpu.dimension_semantics<parallel>], iteration_bounds = array<i64: 2>, scalar_prefetch = 0 : i64, scratch_operands = 0 : i64, tpu.core_type = #tpu.core_type<tc>, window_params = [{transform_indices = @transform_0, window_bounds = array<i64: 1, 64, 64, 3>}, {pipeline_mode = #tpu.pipeline_mode<synchronous>, transform_indices = @transform_1, window_bounds = array<i64: 139, 64>}, {transform_indices = @transform_2, window_bounds = array<i64: 1, 64, 139, 3>}]} {
    %c0_i32 = arith.constant 0 : i32
    %c64_i32 = arith.constant 64 : i32
    %0 = arith.addi %c0_i32, %c64_i32 : i32
    %c1_i32 = arith.constant 1 : i32
    scf.for %arg4 = %c0_i32 to %0 step %c1_i32  : i32 {
      %c0 = arith.constant 0 : index
      %c0_1 = arith.constant 0 : index
      %1 = vector.load %arg2[%c0, %c0_1] : memref<139x64xf32, #tpu.memory_space<vmem>>, vector<139x64xf32>
      %c0_2 = arith.constant 0 : index
      %2 = arith.index_cast %arg4 : i32 to index
      %c0_3 = arith.constant 0 : index
      %c0_4 = arith.constant 0 : index
      %3 = vector.load %arg1[%c0_2, %2, %c0_3, %c0_4] : memref<1x64x64x3xf32, #tpu.memory_space<vmem>>, vector<1x1x64x3xf32>
      %4 = vector.shape_cast %3 : vector<1x1x64x3xf32> to vector<64x3xf32>
      %cst = arith.constant dense<0.000000e+00> : vector<139x3xf32>
      %5 = tpu.matmul %1, %4, %cst {dimension_numbers = #tpu.dot_dimension_numbers<[1], [0], [0], [1], [0, 0, 1, 1], [], []>} : vector<139x64xf32>, vector<64x3xf32>, vector<139x3xf32> -> vector<139x3xf32>
      %c0_5 = arith.constant 0 : index
      %6 = arith.index_cast %arg4 : i32 to index
      %c0_6 = arith.constant 0 : index
      %c0_7 = arith.constant 0 : index
      %7 = vector.load %arg3[%c0_5, %6, %c0_6, %c0_7] : memref<1x64x139x3xf32, #tpu.memory_space<vmem>>, vector<1x1x139x3xf32>
      %8 = vector.shape_cast %7 : vector<1x1x139x3xf32> to vector<139x3xf32>
      %9 = vector.shape_cast %5 : vector<139x3xf32> to vector<1x1x139x3xf32>
      tpu.vector_store %arg3[%c0_5, %6, %c0_6, %c0_7], %9 {strides = array<i32>} : memref<1x64x139x3xf32, #tpu.memory_space<vmem>>, vector<1x1x139x3xf32>,
    }
    %c64_i32_0 = arith.constant 64 : i32
    return
  }
  func.func @transform_0(%arg0: i32) -> (i32, i32, i32, i32) {
    %c0_i32 = arith.constant 0 : i32
    %c0_i32_0 = arith.constant 0 : i32
    %c0_i32_1 = arith.constant 0 : i32
    %c0_i32_2 = arith.constant 0 : i32
    return %arg0, %c0_i32, %c0_i32_0, %c0_i32_1 : i32, i32, i32, i32
  }
  func.func @transform_1(%arg0: i32) -> (i32, i32) {
    %c0_i32 = arith.constant 0 : i32
    %c0_i32_0 = arith.constant 0 : i32
    %c0_i32_1 = arith.constant 0 : i32
    return %c0_i32, %c0_i32_0 : i32, i32
  }
  func.func @transform_2(%arg0: i32) -> (i32, i32, i32, i32) {
    %c0_i32 = arith.constant 0 : i32
    %c0_i32_0 = arith.constant 0 : i32
    %c0_i32_1 = arith.constant 0 : i32
    %c0_i32_2 = arith.constant 0 : i32
    return %arg0, %c0_i32, %c0_i32_0, %c0_i32_1 : i32, i32, i32, i32
  }
}

</mosaic_0001>

<bundles_post_ra>
// kernel: tpu_custom_call.1
= control target key start
LH: loop header
LB: loop body
LE: loop exit
PB: predicated region body
PF: predicated region fallthrough
CT: control target
= control target key end

     0   :  { %s637_s9 = smov 0   ;;  %s789_s0 = inlined_call_operand.vmem [shape: f32[2,64,64,3], index: 0, kind: input, shape index: {}]   ;;  %s790_s1 = inlined_call_operand.vmem [shape: f32[139,64], index: 1, kind: input, shape index: {}]   ;;  %s791_s2 = inlined_call_operand.vmem [shape: f32[2,64,139,3], index: 2, kind: output, shape index: {}]  }
   0x1 LB: > { %s474_s10 = sadd.s32 4294967295, %s616_s9   ;;  %p478_p0 = scmp.ge.s32.totalorder %s616_s9, 1  ;;  %s616_s9 = sphi %s637_s9, %s12_s9  }
   0x2   : > { %p112_p1 = scmp.lt.s32.totalorder %s616_s9, 3 }
   0x4   : > { %p113_p2 = pnand %p478_p0, %p112_p1 }
   0x5   : > { %p134_p3 = scmp.lt.s32.totalorder (!%p113_p2), %s474_s10, 1  ;;  %s655_s19 = smov (!%p113_p2), 0  }
   0x6   : > { %116 = sbr.rel (%p113_p2) target bundleno = 246 (0xf6), region = 28 }
   0xb   : > { %s793_s10 = smov (!%p134_p3, %s474_s10), 1 }
   0xc   : > { %s503_s11 = sshll.u32 %s793_s10, 12  ;;  %s589_s12 = smul.u32 9216, %s793_s10 }
   0xd   : > { %s648_s15 = scalar_lea.vmem %s789_s0, %s503_s11 }
   0xe   : > { %s653_s18 = scalar_lea.vmem %s791_s2, %s589_s12 }
   0xf LB: >> { %v150_v0 = vld [vmem:[%s790_s1] sm:$0xff]  ;;  %vm178_vm0 = vcmask 523264   ;;  %v160_v1 = vld [vmem:[%s790_s1 + $0x50] sm:$0xff]  ;;  %s482_s24 = sshll.u32 %s620_s19, 6  ;;  %v151_v10 = vld [vmem:[%s790_s1 + $0x8] sm:$0xff]  ;;  %s388_s6 = smul.u32 144, %s620_s19  ;;  %s620_s19 = sphi %s655_s19, %s149_s19  }
  0x10   : >> { %546 = vmatprep.mubr.msk.f32.mxu0 %vm178_vm0, %v150_v0  ;;  %561 = vmatprep.mubr.msk.f32.mxu1 %vm178_vm0, %v160_v1  ;;  %s670_s25 = scalar_lea.vmem %s648_s15, %s482_s24  ;;  %v161_v11 = vld [vmem:[%s790_s1 + $0x58] sm:$0xff]  ;;  %v152_v12 = vld [vmem:[%s790_s1 + $0x10] sm:$0xff]  ;;  %v162_v13 = vld [vmem:[%s790_s1 + $0x60] sm:$0xff]  ;;  %vm390_vm1 = vcmask 23552   ;;  %vm408_vm2 = vcmask 18432   ;;  %s149_s19 = sadd.s32 1, %s620_s19  }
  0x11   : >> { %v177_v2 = vld [vmem:[%s670_s25 + $0x38] sm:$0xff]  ;;  %v176_v3 = vld [vmem:[%s670_s25 + $0x30] sm:$0xff]  ;;  %v175_v4 = vld [vmem:[%s670_s25 + $0x28] sm:$0xff]  ;;  %s746_s7 = scalar_lea.vmem %s653_s18, %s388_s6  ;;  %p146_p4 = scmp.ge.s32.totalorder %s149_s19, 64  }
  0x12   : >> { %530 = vmatprep.subr.mxu0 %v177_v2  ;;  %573 = vmatprep.subr.mxu1 %v177_v2  ;;  %v174_v5 = vld [vmem:[%s670_s25 + $0x20] sm:$0xff]  ;;  %v173_v6 = vld [vmem:[%s670_s25 + $0x18] sm:$0xff]  ;;  %v172_v7 = vld [vmem:[%s670_s25 + $0x10] sm:$0xff] }
  0x13   : >> { %531 = vmatpush3.msra.mxu0 %v177_v2  ;;  %581 = vmatpush3.msra.mxu1 %v177_v2  ;;  %v171_v8 = vld [vmem:[%s670_s25 + $0x8] sm:$0xff]  ;;  %v170_v9 = vld [vmem:[%s670_s25] sm:$0xff]  ;;  %v153_v14 = vld [vmem:[%s790_s1 + $0x18] sm:$0xff] }
  0x14   : >> { %532 = vmatprep.subr.mxu0 %v176_v3  ;;  %574 = vmatprep.subr.mxu1 %v176_v3  ;;  %v163_v15 = vld [vmem:[%s790_s1 + $0x68] sm:$0xff]  ;;  %v154_v16 = vld [vmem:[%s790_s1 + $0x20] sm:$0xff]  ;;  %v164_v17 = vld [vmem:[%s790_s1 + $0x70] sm:$0xff] }
  0x15   : >> { %533 = vmatpush3.msra.mxu0 %v176_v3  ;;  %582 = vmatpush3.msra.mxu1 %v176_v3  ;;  %v155_v18 = vld [vmem:[%s790_s1 + $0x28] sm:$0xff]  ;;  %v165_v19 = vld [vmem:[%s790_s1 + $0x78] sm:$0xff]  ;;  %v156_v20 = vld [vmem:[%s790_s1 + $0x30] sm:$0xff] }
  0x16   : >> { %534 = vmatprep.subr.mxu0 %v175_v4  ;;  %575 = vmatprep.subr.mxu1 %v175_v4  ;;  %v166_v21 = vld [vmem:[%s790_s1 + $0x80] sm:$0xff]  ;;  %v157_v22 = vld [vmem:[%s790_s1 + $0x38] sm:$0xff]  ;;  %v167_v23 = vld [vmem:[%s790_s1 + $0x88] sm:$0x7] }
  0x17   : >> { %535 = vmatpush3.msra.mxu0 %v175_v4  ;;  %583 = vmatpush3.msra.mxu1 %v175_v4  ;;  %v158_v24 = vld [vmem:[%s790_s1 + $0x40] sm:$0xff]  ;;  %v159_v25 = vld [vmem:[%s790_s1 + $0x48] sm:$0xff] }
  0x18   : >> { %536 = vmatprep.subr.mxu0 %v174_v5  ;;  %576 = vmatprep.subr.mxu1 %v174_v5 }
  0x19   : >> { %537 = vmatpush3.msra.mxu0 %v174_v5  ;;  %584 = vmatpush3.msra.mxu1 %v174_v5 }
  0x1a   : >> { %538 = vmatprep.subr.mxu0 %v173_v6  ;;  %577 = vmatprep.subr.mxu1 %v173_v6 }
  0x1b   : >> { %539 = vmatpush3.msra.mxu0 %v173_v6  ;;  %585 = vmatpush3.msra.mxu1 %v173_v6 }
  0x1c   : >> { %540 = vmatprep.subr.mxu0 %v172_v7  ;;  %578 = vmatprep.subr.mxu1 %v172_v7 }
  0x1d   : >> { %541 = vmatpush3.msra.mxu0 %v172_v7  ;;  %586 = vmatpush3.msra.mxu1 %v172_v7 }
  0x1e   : >> { %542 = vmatprep.subr.mxu0 %v171_v8  ;;  %579 = vmatprep.subr.mxu1 %v171_v8 }
  0x1f   : >> { %543 = vmatpush3.msra.mxu0 %v171_v8  ;;  %587 = vmatpush3.msra.mxu1 %v171_v8 }
  0x20   : >> { %544 = vmatprep.subr.mxu0 %v170_v9  ;;  %580 = vmatprep.subr.mxu1 %v170_v9 }
  0x21   : >> { %545 = vmatpush3.msra.mxu0 %v170_v9  ;;  %588 = vmatpush3.msra.mxu1 %v170_v9 }
  0x22   : >> { %547 = vmatmul.mubr.msk.f32.vlgmr.msra.gmra.mxu0 %vm178_vm0, %v151_v10  ;;  %562 = vmatmul.mubr.msk.f32.vlgmr.msra.gmra.mxu1 %vm178_vm0, %v161_v11 }
  0x23   : >> { %549 = vmatprep.mubr.msk.f32.mxu0 %vm178_vm0, %v152_v12  ;;  %564 = vmatprep.mubr.msk.f32.mxu1 %vm178_vm0, %v162_v13 }
  0x26   : >> { %550 = vmatmul.mubr.msk.f32.gmra.mxu0 %vm178_vm0, %v153_v14  ;;  %565 = vmatmul.mubr.msk.f32.gmra.mxu1 %vm178_vm0, %v163_v15 }
  0x27   : >> { %552 = vmatprep.mubr.msk.f32.mxu0 %vm178_vm0, %v154_v16  ;;  %567 = vmatprep.mubr.msk.f32.mxu1 %vm178_vm0, %v164_v17 }
  0x2a   : >> { %553 = vmatmul.mubr.msk.f32.gmra.mxu0 %vm178_vm0, %v155_v18  ;;  %568 = vmatmul.mubr.msk.f32.gmra.mxu1 %vm178_vm0, %v165_v19 }
  0x2b   : >> { %555 = vmatprep.mubr.msk.f32.mxu0 %vm178_vm0, %v156_v20  ;;  %570 = vmatprep.mubr.msk.f32.mxu1 %vm178_vm0, %v166_v21 }
  0x2e   : >> { %556 = vmatmul.mubr.msk.f32.gmra.mxu0 %vm178_vm0, %v157_v22  ;;  %571 = vmatmul.mubr.msk.f32.gmra.mxu1 %vm178_vm0, %v167_v23 }
  0x2f   : >> { %558 = vmatprep.mubr.msk.f32.mxu0 %vm178_vm0, %v158_v24 }
  0x32   : >> { %559 = vmatmul.mubr.msk.f32.gmra.mxu0 %vm178_vm0, %v159_v25 }
  0xe2   : >> { %v548_v26 = vpop.f32.mrf.mxu0  ;;  %v563_v27 = vpop.f32.mrf.mxu1 }
  0xe3   : >> { %392 = vst.msk [vmem:[%s746_s7 + $0x8] sm:$0xff] %vm390_vm1, %v548_v26  ;;  %402 = vst.msk [vmem:[%s746_s7 + $0x58] sm:$0xff] %vm390_vm1, %v563_v27 }
  0xe4   : >> { %v299_v28 = vpop.f32.mrf.mxu0  ;;  %v349_v29 = vpop.f32.mrf.mxu1 }
  0xe5   : >> { %391 = vst.msk [vmem:[%s746_s7] sm:$0xff] %vm390_vm1, %v299_v28  ;;  %401 = vst.msk [vmem:[%s746_s7 + $0x50] sm:$0xff] %vm390_vm1, %v349_v29 }
  0xe6   : >> { %v551_v30 = vpop.f32.mrf.mxu0  ;;  %v566_v31 = vpop.f32.mrf.mxu1 }
  0xe7   : >> { %394 = vst.msk [vmem:[%s746_s7 + $0x18] sm:$0xff] %vm390_vm1, %v551_v30  ;;  %404 = vst.msk [vmem:[%s746_s7 + $0x68] sm:$0xff] %vm390_vm1, %v566_v31 }
  0xe8   : >> { %v309_v32 = vpop.f32.mrf.mxu0  ;;  %v359_v33 = vpop.f32.mrf.mxu1 }
  0xe9   : >> { %393 = vst.msk [vmem:[%s746_s7 + $0x10] sm:$0xff] %vm390_vm1, %v309_v32  ;;  %403 = vst.msk [vmem:[%s746_s7 + $0x60] sm:$0xff] %vm390_vm1, %v359_v33 }
  0xea   : >> { %v554_v34 = vpop.f32.mrf.mxu0  ;;  %v569_v35 = vpop.f32.mrf.mxu1 }
  0xeb   : >> { %396 = vst.msk [vmem:[%s746_s7 + $0x28] sm:$0xff] %vm390_vm1, %v554_v34  ;;  %406 = vst.msk [vmem:[%s746_s7 + $0x78] sm:$0xff] %vm390_vm1, %v569_v35 }
  0xec   : >> { %v319_v36 = vpop.f32.mrf.mxu0  ;;  %v369_v37 = vpop.f32.mrf.mxu1 }
  0xed   : >> { %395 = vst.msk [vmem:[%s746_s7 + $0x20] sm:$0xff] %vm390_vm1, %v319_v36  ;;  %405 = vst.msk [vmem:[%s746_s7 + $0x70] sm:$0xff] %vm390_vm1, %v369_v37 }
  0xee   : >> { %v557_v38 = vpop.f32.mrf.mxu0  ;;  %v572_v39 = vpop.f32.mrf.mxu1 }
  0xef   : >> { %398 = vst.msk [vmem:[%s746_s7 + $0x38] sm:$0xff] %vm390_vm1, %v557_v38 }
  0xf0   : >> { %409 = vst.msk [vmem:[%s746_s7 + $0x88] sm:$0x7] %vm408_vm2, %v572_v39  ;;  %v329_v40 = vpop.f32.mrf.mxu0  ;;  %v379_v41 = vpop.f32.mrf.mxu1 }
  0xf1   : >> { %397 = vst.msk [vmem:[%s746_s7 + $0x30] sm:$0xff] %vm390_vm1, %v329_v40  ;;  %407 = vst.msk [vmem:[%s746_s7 + $0x80] sm:$0xff] %vm390_vm1, %v379_v41  ;;  %148 = sbr.rel (!%p146_p4) target bundleno = 15 (0xf), region = 67 }
  0xf2   : >> { %v560_v42 = vpop.f32.mrf.mxu0 }
  0xf3   : >> { %400 = vst.msk [vmem:[%s746_s7 + $0x48] sm:$0xff] %vm390_vm1, %v560_v42 }
  0xf4   : >> { %v339_v43 = vpop.f32.mrf.mxu0 }
  0xf5   : >> { %399 = vst.msk [vmem:[%s746_s7 + $0x40] sm:$0xff] %vm390_vm1, %v339_v43 }
  0xf6 PF: > { %s12_s9 = sadd.s32 1, %s616_s9  }
  0xf7   : > { %p9_p5 = scmp.ge.s32.totalorder %s12_s9, 4  }
  0xf9   :  { %11 = sbr.rel (!%p9_p5) target bundleno = 1 (0x1), region = 78 }

</bundles_post_ra>
